<compile_context>
chip_gen: v5e
topology: v5e:2x2
jax: 0.10.0
libtpu: 0.0.40
codegen_flags: <defaults>
</compile_context>

<pallas_src>
import functools

import jax
import jax.numpy as jnp
from jax.experimental import pallas as pl
from jax.experimental.pallas import tpu as pltpu


def _round_up(x, m):
    return (x + m - 1) // m * m


# ------------------------------ Pallas kernel --------------------------------
def rrnn_cell_kernel(x_ref, w_ref, b_ref, h_ref, c1f_ref, c2f_ref,
                     c1_sc, c2_sc, *, t_blk, b_pad, seq_len, l_pad):
    """One (hidden-tile j, time-block tb) grid step.

    x_ref  : (t_blk*b_pad, n_in+1) bf16  -- t_blk steps, batch folded into rows,
                                            trailing column is constant 1.0
    w_ref  : (5, n_in+1, p_tile)   bf16  -- gate-major weights; last input row
                                            holds the folded gate biases
    b_ref  : (3, p_tile)           f32   -- rows: eps, rho0, rho1
    h_ref  : (t_blk*b_pad, p_tile) f32   -- hidden-sequence output tile
    c1f/c2f: (b_pad, p_tile)       f32   -- final recurrent state (last block only)
    c1/c2_sc: (b_pad, p_tile) VMEM f32   -- recurrent state carried across blocks
    """
    tb = pl.program_id(1)
    p_tile = c1_sc.shape[-1]

    @pl.when(tb == 0)
    def _():
        c1_sc[...] = jnp.zeros_like(c1_sc)
        c2_sc[...] = jnp.zeros_like(c2_sc)

    x2d = x_ref[...]  # (t_blk*b_pad, n_in+1) bf16

    # One tall, lane-aligned MXU matmul per gate (bias folded via ones column).
    def proj(g):
        return jnp.dot(x2d, w_ref[g], preferred_element_type=jnp.float32)

    u1 = proj(0)
    u2 = proj(1)
    forget1 = jax.nn.sigmoid(proj(2))
    forget2 = jax.nn.sigmoid(proj(3))
    out_gate = jax.nn.sigmoid(proj(4))
    uu1 = u1 * (1.0 - forget1)
    uu2 = u2 * (1.0 - forget2)

    # Hoist broadcasts out of the unrolled time loop (JAX does not CSE them).
    eps = jnp.broadcast_to(b_ref[0:1, :], (b_pad, p_tile))
    rho0 = jnp.broadcast_to(b_ref[1:2, :], (b_pad, p_tile))
    rho1 = jnp.broadcast_to(b_ref[2:3, :], (b_pad, p_tile))

    needs_mask = (l_pad != seq_len)  # static: only true when L % t_blk != 0

    c1 = c1_sc[...]
    c2 = c2_sc[...]
    for i in range(t_blk):  # static, fully unrolled sequential scan
        r0 = i * b_pad
        c1_t = c1 * forget1[r0:r0 + b_pad, :] + uu1[r0:r0 + b_pad, :]
        c2_t = (c2 * forget2[r0:r0 + b_pad, :]
                + (eps + c1) * uu2[r0:r0 + b_pad, :])
        if needs_mask:
            # Freeze the state on padded tail steps (scalar blend, no relayout).
            keep = ((tb * t_blk + i) < seq_len).astype(jnp.float32)
            c1_t = keep * c1_t + (1.0 - keep) * c1
            c2_t = keep * c2_t + (1.0 - keep) * c2
        c1, c2 = c1_t, c2_t
        h_ref[r0:r0 + b_pad, :] = jnp.tanh(
            out_gate[r0:r0 + b_pad, :] * (c1 * rho0 + c2 * rho1)
        ).astype(h_ref.dtype)

    c1_sc[...] = c1
    c2_sc[...] = c2

    # Final states: cast + store only once, on the last time block.
    @pl.when(tb == pl.num_programs(1) - 1)
    def _():
        c1f_ref[...] = c1.astype(c1f_ref.dtype)
        c2f_ref[...] = c2.astype(c2f_ref.dtype)


# ------------------------------- wrapper --------------------------------------
def rrnn_cell_forward(x, w_aug, b3, n_out, *, t_blk=32):
    """One RRNNCell.real_forward (eval mode, init_hidden=None). x: (L, B, n_in) f32."""
    L, B, n_in = x.shape
    _, n_in_aug, P = w_aug.shape
    assert n_in_aug == n_in + 1
    p_tile = min(P, 256)            # 128-multiple channel tiles (>=256 fills MXU N)
    n_j = P // p_tile
    b_pad = _round_up(B, 8)         # sublane-dense rows
    t_blk = max(1, min(t_blk, L))
    l_pad = _round_up(L, t_blk)
    n_tb = l_pad // t_blk

    # Pad batch/time, append the constant "ones" bias column, fold (time, batch)
    # into rows, and cast the matmul operand to bf16.
    xp = jnp.zeros((l_pad, b_pad, n_in_aug), jnp.float32)
    xp = xp.at[:L, :B, :n_in].set(x)
    xp = xp.at[:, :, n_in].set(1.0)
    x2d = xp.reshape(l_pad * b_pad, n_in_aug).astype(jnp.bfloat16)

    kernel = functools.partial(rrnn_cell_kernel, t_blk=t_blk, b_pad=b_pad,
                               seq_len=L, l_pad=l_pad)

    h2d, c1f, c2f = pl.pallas_call(
        kernel,
        out_shape=(
            jax.ShapeDtypeStruct((l_pad * b_pad, P), jnp.float32),
            jax.ShapeDtypeStruct((b_pad, P), jnp.float32),
            jax.ShapeDtypeStruct((b_pad, P), jnp.float32),
        ),
        grid_spec=pltpu.PrefetchScalarGridSpec(
            num_scalar_prefetch=0,
            grid=(n_j, n_tb),  # (independent hidden tiles, sequential time blocks)
            in_specs=[
                pl.BlockSpec((t_blk * b_pad, n_in_aug), lambda j, tb: (tb, 0)),
                # W / b3 are grid-invariant along tb; for very large weights on
                # v7x (64 MiB VMEM) they should additionally be single-buffered.
                pl.BlockSpec((5, n_in_aug, p_tile), lambda j, tb: (0, 0, j)),
                pl.BlockSpec((3, p_tile), lambda j, tb: (0, j)),
            ],
            out_specs=[
                pl.BlockSpec((t_blk * b_pad, p_tile), lambda j, tb: (tb, j)),
                pl.BlockSpec((b_pad, p_tile), lambda j, tb: (0, j)),
                pl.BlockSpec((b_pad, p_tile), lambda j, tb: (0, j)),
            ],
            scratch_shapes=[
                pltpu.VMEM((b_pad, p_tile), jnp.float32),
                pltpu.VMEM((b_pad, p_tile), jnp.float32),
            ],
        ),
        compiler_params=pltpu.CompilerParams(
            # hidden tiles are independent -> parallel (2 TCs on v7x);
            # the time recurrence is sequential -> arbitrary.
            dimension_semantics=("parallel", "arbitrary"),
            vmem_limit_bytes=32 * 1024 * 1024,
        ),
    )(x2d, w_aug, b3)

    h = h2d.reshape(l_pad, b_pad, P)[:L, :B, :n_out]
    return h, c1f[:B, :n_out], c2f[:B, :n_out]


def rrnn_forward(x, kernel_params, *, t_blk=32):
    """Stack of RRNNCells (unidirectional, eval mode, init_hidden=None)."""
    prevx = x
    c1s, c2s = [], []
    for (w_aug, b3, n_out) in kernel_params:
        h, c1f, c2f = rrnn_cell_forward(prevx, w_aug, b3, n_out, t_blk=t_blk)
        prevx = h
        c1s.append(c1f)
        c2s.append(c2f)
    return prevx, (jnp.stack(c1s, axis=0), jnp.stack(c2s, axis=0))


# --------------------------- parameter handling --------------------------------
def init_rrnn_params(key, input_size, hidden_size, num_layers, rnn_dropout=0.2):
    """Mirrors RRNNCell.__init__/init_weights (k = n_bias = 5, bidir = 1).

    weight ~ U(-sqrt(6/(n_in+n_out)), +...), rescaled by sqrt(1-rnn_dropout).
    The torch module zeroes the biases; we use small random values so every
    bias path (forget/output biases, eps, rho) is exercised.
    Returns per-layer (w (n_in, n_out, 5), bias (5, n_out), bias_eps (n_out,),
    bias_final (n_out, 2)).
    """
    layers = []
    n_in = input_size
    for _ in range(num_layers):
        n_out = hidden_size
        key, k_w, k_b, k_e, k_f = jax.random.split(key, 5)
        val_range = (6.0 / (n_in + n_out)) ** 0.5
        w = jax.random.uniform(k_w, (n_in, n_out, 5), jnp.float32,
                               minval=-val_range, maxval=val_range)
        w = w * (1.0 - rnn_dropout) ** 0.5
        bias = 0.1 * jax.random.normal(k_b, (5, n_out), jnp.float32)
        bias_eps = 0.1 * jax.random.normal(k_e, (n_out,), jnp.float32)
        bias_final = 0.1 * jax.random.normal(k_f, (n_out, 2), jnp.float32)
        layers.append((w, bias, bias_eps, bias_final))
        n_in = n_out
    return layers


def prep_kernel_params(raw_params):
    """Torch-style params -> fused-kernel layout.

    Per layer returns (w_aug, b3, n_out):
      w_aug : (5, n_in+1, P) bf16, P = round_up(n_out, 128); gate-major weights,
              channel dim zero-padded, with the forget1/forget2/output additive
              biases folded into one extra input row (matches the ones column).
      b3    : (3, P) f32 with rows (eps = sigmoid(bias_eps),
              rho0, rho1 = sigmoid(bias_final)).
    """
    out = []
    for (w, bias, bias_eps, bias_final) in raw_params:
        n_in, n_out, _ = w.shape
        P = _round_up(n_out, 128)
        wk = jnp.transpose(w, (2, 0, 1))                         # (5, n_in, n_out)
        zero = jnp.zeros_like(bias[0])
        bias_row = jnp.stack([zero, zero, bias[2], bias[3], bias[4]],
                             axis=0)[:, None, :]                 # (5, 1, n_out)
        w_aug = jnp.concatenate([wk, bias_row], axis=1)          # (5, n_in+1, n_out)
        w_aug = jnp.pad(w_aug, ((0, 0), (0, 0), (0, P - n_out))).astype(jnp.bfloat16)
        eps = jax.nn.sigmoid(bias_eps)
        rho = jax.nn.sigmoid(bias_final)                         # (n_out, 2)
        b3 = jnp.stack([eps, rho[:, 0], rho[:, 1]], axis=0)      # (3, n_out)
        b3 = jnp.pad(b3, ((0, 0), (0, P - n_out))).astype(jnp.float32)
        out.append((w_aug, b3, n_out))
    return out


# ------------- pure-JAX reference (PyTorch real_forward semantics) -------------
def rrnn_cell_ref(x, w, bias, bias_eps, bias_final, matmul_dtype=None):
    if matmul_dtype is not None:   # emulate the kernel's reduced-precision operands
        x = x.astype(matmul_dtype).astype(jnp.float32)
        w = w.astype(matmul_dtype).astype(jnp.float32)
        bias = bias.astype(matmul_dtype).astype(jnp.float32)
    L, B, _ = x.shape
    n_out = w.shape[1]
    u_ = jnp.einsum("lbi,iok->lbok", x, w)                       # (L, B, n_out, 5)
    forget1 = jax.nn.sigmoid(u_[..., 2] + bias[2])
    forget2 = jax.nn.sigmoid(u_[..., 3] + bias[3])
    out_gate = jax.nn.sigmoid(u_[..., 4] + bias[4])
    uu1 = u_[..., 0] * (1.0 - forget1)
    uu2 = u_[..., 1] * (1.0 - forget2)
    eps = jax.nn.sigmoid(bias_eps)
    rho = jax.nn.sigmoid(bias_final)
    c1 = jnp.zeros((B, n_out), jnp.float32)
    c2 = jnp.zeros((B, n_out), jnp.float32)
    c1s, c2s = [], []
    for t in range(L):
        c1n = c1 * forget1[t] + uu1[t]
        c2n = c2 * forget2[t] + (eps + c1) * uu2[t]
        c1, c2 = c1n, c2n
        c1s.append(c1)
        c2s.append(c2)
    cs = jnp.stack(c1s) * rho[:, 0] + jnp.stack(c2s) * rho[:, 1]
    return jnp.tanh(out_gate * cs), c1, c2


def rrnn_ref(x, raw_params, matmul_dtype=None):
    prevx = x
    c1s, c2s = [], []
    for (w, bias, bias_eps, bias_final) in raw_params:
        h, c1, c2 = rrnn_cell_ref(prevx, w, bias, bias_eps, bias_final, matmul_dtype)
        prevx = h
        c1s.append(c1)
        c2s.append(c2)
    return prevx, (jnp.stack(c1s), jnp.stack(c2s))


if __name__ == "__main__":
    # Deliberately awkward small shapes: L=10 with t_blk=4 exercises multi-block
    # time pipelining and the padded-tail mask; B=3 exercises batch padding.
    length, batch = 10, 3
    input_size, hidden_size, num_layers = 16, 32, 2

    key = jax.random.PRNGKey(0)
    key, kx = jax.random.split(key)
    x = jax.random.normal(kx, (length, batch, input_size), jnp.float32)
    raw_params = init_rrnn_params(key, input_size, hidden_size, num_layers)
    kparams = prep_kernel_params(raw_params)

    out, (c1_stack, c2_stack) = rrnn_forward(x, kparams, t_blk=4)
    out = jax.block_until_ready(out)
    c1_stack = jax.block_until_ready(c1_stack)
    c2_stack = jax.block_until_ready(c2_stack)

    assert out.shape == (length, batch, hidden_size)
    assert c1_stack.shape == (num_layers, batch, hidden_size)
    assert c2_stack.shape == (num_layers, batch, hidden_size)

    # Tight check against a reference that uses the same bf16 matmul operands.
    ref_out_m, (ref_c1_m, ref_c2_m) = rrnn_ref(x, raw_params, matmul_dtype=jnp.bfloat16)
    assert jnp.allclose(out, ref_out_m, atol=1e-2, rtol=1e-2)
    assert jnp.allclose(c1_stack, ref_c1_m, atol=1e-2, rtol=1e-2)
    assert jnp.allclose(c2_stack, ref_c2_m, atol=1e-2, rtol=1e-2)

    # Looser check against the exact f32 PyTorch semantics (difference is only
    # the deliberate bf16 rounding of the MXU operands).
    ref_out, (ref_c1, ref_c2) = rrnn_ref(x, raw_params)
    assert jnp.allclose(out, ref_out, atol=5e-2, rtol=5e-2)
    assert jnp.allclose(c1_stack, ref_c1, atol=5e-2, rtol=5e-2)
    assert jnp.allclose(c2_stack, ref_c2, atol=5e-2, rtol=5e-2)

    print("KERNEL_OK")
</pallas_src>

<mosaic_0001>
module attributes {stable_mosaic.version = 11 : i64} {
  func.func @rrnn_cell_kernel(%arg0: i32, %arg1: i32, %arg2: memref<32x17xbf16, #tpu.memory_space<vmem>>, %arg3: memref<5x17x128xbf16, #tpu.memory_space<vmem>>, %arg4: memref<3x128xf32, #tpu.memory_space<vmem>>, %arg5: memref<32x128xf32, #tpu.memory_space<vmem>>, %arg6: memref<8x128xf32, #tpu.memory_space<vmem>>, %arg7: memref<8x128xf32, #tpu.memory_space<vmem>>, %arg8: memref<8x128xf32, #tpu.memory_space<vmem>>, %arg9: memref<8x128xf32, #tpu.memory_space<vmem>>) attributes {dimension_semantics = [#tpu.dimension_semantics<parallel>, #tpu.dimension_semantics<arbitrary>], iteration_bounds = array<i64: 1, 3>, scalar_prefetch = 0 : i64, scratch_operands = 2 : i64, tpu.core_type = #tpu.core_type<tc>, window_params = [{transform_indices = @transform_0, window_bounds = array<i64: 32, 17>}, {transform_indices = @transform_1, window_bounds = array<i64: 5, 17, 128>}, {transform_indices = @transform_2, window_bounds = array<i64: 3, 128>}, {transform_indices = @transform_3, window_bounds = array<i64: 32, 128>}, {transform_indices = @transform_4, window_bounds = array<i64: 8, 128>}, {transform_indices = @transform_5, window_bounds = array<i64: 8, 128>}]} {
    %c0_i32 = arith.constant 0 : i32
    %0 = arith.cmpi eq, %arg1, %c0_i32 : i32
    %1 = arith.extui %0 : i1 to i32
    %c0_i32_0 = arith.constant 0 : i32
    %2 = arith.cmpi ne, %1, %c0_i32_0 : i32
    scf.if %2 {
      %cst_58 = arith.constant 0.000000e+00 : f32
      %192 = vector.broadcast %cst_58 : f32 to vector<8x128xf32>
      %c0_59 = arith.constant 0 : index
      %c0_60 = arith.constant 0 : index
      %193 = vector.load %arg8[%c0_59, %c0_60] : memref<8x128xf32, #tpu.memory_space<vmem>>, vector<8x128xf32>
      tpu.vector_store %arg8[%c0_59, %c0_60], %192 {strides = array<i32>} : memref<8x128xf32, #tpu.memory_space<vmem>>, vector<8x128xf32>,
      %cst_61 = arith.constant 0.000000e+00 : f32
      %194 = vector.broadcast %cst_61 : f32 to vector<8x128xf32>
      %c0_62 = arith.constant 0 : index
      %c0_63 = arith.constant 0 : index
      %195 = vector.load %arg9[%c0_62, %c0_63] : memref<8x128xf32, #tpu.memory_space<vmem>>, vector<8x128xf32>
      tpu.vector_store %arg9[%c0_62, %c0_63], %194 {strides = array<i32>} : memref<8x128xf32, #tpu.memory_space<vmem>>, vector<8x128xf32>,
    } else {
    }
    %c0 = arith.constant 0 : index
    %c0_1 = arith.constant 0 : index
    %3 = vector.load %arg2[%c0, %c0_1] : memref<32x17xbf16, #tpu.memory_space<vmem>>, vector<32x17xbf16>
    %c0_2 = arith.constant 0 : index
    %c0_3 = arith.constant 0 : index
    %c0_4 = arith.constant 0 : index
    %4 = vector.load %arg3[%c0_2, %c0_3, %c0_4] : memref<5x17x128xbf16, #tpu.memory_space<vmem>>, vector<1x17x128xbf16>
    %5 = vector.shape_cast %4 : vector<1x17x128xbf16> to vector<17x128xbf16>
    %cst = arith.constant dense<0.000000e+00> : vector<32x128xf32>
    %6 = tpu.matmul %3, %5, %cst {dimension_numbers = #tpu.dot_dimension_numbers<[1], [0], [0], [1], [0, 0, 1, 1], [], []>} : vector<32x17xbf16>, vector<17x128xbf16>, vector<32x128xf32> -> vector<32x128xf32>
    %c1 = arith.constant 1 : index
    %c0_5 = arith.constant 0 : index
    %c0_6 = arith.constant 0 : index
    %7 = vector.load %arg3[%c1, %c0_5, %c0_6] : memref<5x17x128xbf16, #tpu.memory_space<vmem>>, vector<1x17x128xbf16>
    %8 = vector.shape_cast %7 : vector<1x17x128xbf16> to vector<17x128xbf16>
    %cst_7 = arith.constant dense<0.000000e+00> : vector<32x128xf32>
    %9 = tpu.matmul %3, %8, %cst_7 {dimension_numbers = #tpu.dot_dimension_numbers<[1], [0], [0], [1], [0, 0, 1, 1], [], []>} : vector<32x17xbf16>, vector<17x128xbf16>, vector<32x128xf32> -> vector<32x128xf32>
    %c2 = arith.constant 2 : index
    %c0_8 = arith.constant 0 : index
    %c0_9 = arith.constant 0 : index
    %10 = vector.load %arg3[%c2, %c0_8, %c0_9] : memref<5x17x128xbf16, #tpu.memory_space<vmem>>, vector<1x17x128xbf16>
    %11 = vector.shape_cast %10 : vector<1x17x128xbf16> to vector<17x128xbf16>
    %cst_10 = arith.constant dense<0.000000e+00> : vector<32x128xf32>
    %12 = tpu.matmul %3, %11, %cst_10 {dimension_numbers = #tpu.dot_dimension_numbers<[1], [0], [0], [1], [0, 0, 1, 1], [], []>} : vector<32x17xbf16>, vector<17x128xbf16>, vector<32x128xf32> -> vector<32x128xf32>
    %13 = arith.negf %12 : vector<32x128xf32>
    %14 = math.exp %13 : vector<32x128xf32>
    %cst_11 = arith.constant 1.000000e+00 : f32
    %15 = vector.broadcast %cst_11 : f32 to vector<32x128xf32>
    %16 = arith.addf %15, %14 : vector<32x128xf32>
    %17 = arith.divf %15, %16 : vector<32x128xf32>
    %c3 = arith.constant 3 : index
    %c0_12 = arith.constant 0 : index
    %c0_13 = arith.constant 0 : index
    %18 = vector.load %arg3[%c3, %c0_12, %c0_13] : memref<5x17x128xbf16, #tpu.memory_space<vmem>>, vector<1x17x128xbf16>
    %19 = vector.shape_cast %18 : vector<1x17x128xbf16> to vector<17x128xbf16>
    %cst_14 = arith.constant dense<0.000000e+00> : vector<32x128xf32>
    %20 = tpu.matmul %3, %19, %cst_14 {dimension_numbers = #tpu.dot_dimension_numbers<[1], [0], [0], [1], [0, 0, 1, 1], [], []>} : vector<32x17xbf16>, vector<17x128xbf16>, vector<32x128xf32> -> vector<32x128xf32>
    %21 = arith.negf %20 : vector<32x128xf32>
    %22 = math.exp %21 : vector<32x128xf32>
    %cst_15 = arith.constant 1.000000e+00 : f32
    %23 = vector.broadcast %cst_15 : f32 to vector<32x128xf32>
    %24 = arith.addf %23, %22 : vector<32x128xf32>
    %25 = arith.divf %23, %24 : vector<32x128xf32>
    %c4 = arith.constant 4 : index
    %c0_16 = arith.constant 0 : index
    %c0_17 = arith.constant 0 : index
    %26 = vector.load %arg3[%c4, %c0_16, %c0_17] : memref<5x17x128xbf16, #tpu.memory_space<vmem>>, vector<1x17x128xbf16>
    %27 = vector.shape_cast %26 : vector<1x17x128xbf16> to vector<17x128xbf16>
    %cst_18 = arith.constant dense<0.000000e+00> : vector<32x128xf32>
    %28 = tpu.matmul %3, %27, %cst_18 {dimension_numbers = #tpu.dot_dimension_numbers<[1], [0], [0], [1], [0, 0, 1, 1], [], []>} : vector<32x17xbf16>, vector<17x128xbf16>, vector<32x128xf32> -> vector<32x128xf32>
    %29 = arith.negf %28 : vector<32x128xf32>
    %30 = math.exp %29 : vector<32x128xf32>
    %cst_19 = arith.constant 1.000000e+00 : f32
    %31 = vector.broadcast %cst_19 : f32 to vector<32x128xf32>
    %32 = arith.addf %31, %30 : vector<32x128xf32>
    %33 = arith.divf %31, %32 : vector<32x128xf32>
    %cst_20 = arith.constant 1.000000e+00 : f32
    %34 = vector.broadcast %cst_20 : f32 to vector<32x128xf32>
    %35 = arith.subf %34, %17 : vector<32x128xf32>
    %36 = arith.mulf %6, %35 : vector<32x128xf32>
    %cst_21 = arith.constant 1.000000e+00 : f32
    %37 = vector.broadcast %cst_21 : f32 to vector<32x128xf32>
    %38 = arith.subf %37, %25 : vector<32x128xf32>
    %39 = arith.mulf %9, %38 : vector<32x128xf32>
    %c0_22 = arith.constant 0 : index
    %c0_23 = arith.constant 0 : index
    %40 = vector.load %arg4[%c0_22, %c0_23] : memref<3x128xf32, #tpu.memory_space<vmem>>, vector<1x128xf32>
    %41 = vector.shape_cast %40 : vector<1x128xf32> to vector<1x128xf32>
    %42 = vector.broadcast %41 : vector<1x128xf32> to vector<8x128xf32>
    %c1_24 = arith.constant 1 : index
    %c0_25 = arith.constant 0 : index
    %43 = vector.load %arg4[%c1_24, %c0_25] : memref<3x128xf32, #tpu.memory_space<vmem>>, vector<1x128xf32>
    %44 = vector.shape_cast %43 : vector<1x128xf32> to vector<1x128xf32>
    %45 = vector.broadcast %44 : vector<1x128xf32> to vector<8x128xf32>
    %c2_26 = arith.constant 2 : index
    %c0_27 = arith.constant 0 : index
    %46 = vector.load %arg4[%c2_26, %c0_27] : memref<3x128xf32, #tpu.memory_space<vmem>>, vector<1x128xf32>
    %47 = vector.shape_cast %46 : vector<1x128xf32> to vector<1x128xf32>
    %48 = vector.broadcast %47 : vector<1x128xf32> to vector<8x128xf32>
    %c0_28 = arith.constant 0 : index
    %c0_29 = arith.constant 0 : index
    %49 = vector.load %arg8[%c0_28, %c0_29] : memref<8x128xf32, #tpu.memory_space<vmem>>, vector<8x128xf32>
    %c0_30 = arith.constant 0 : index
    %c0_31 = arith.constant 0 : index
    %50 = vector.load %arg9[%c0_30, %c0_31] : memref<8x128xf32, #tpu.memory_space<vmem>>, vector<8x128xf32>
    %51 = vector.extract_strided_slice %17 {offsets = [0, 0], sizes = [8, 128], strides = [1, 1]} : vector<32x128xf32> to vector<8x128xf32>
    %52 = arith.mulf %49, %51 : vector<8x128xf32>
    %53 = vector.extract_strided_slice %36 {offsets = [0, 0], sizes = [8, 128], strides = [1, 1]} : vector<32x128xf32> to vector<8x128xf32>
    %54 = arith.addf %52, %53 : vector<8x128xf32>
    %55 = vector.extract_strided_slice %25 {offsets = [0, 0], sizes = [8, 128], strides = [1, 1]} : vector<32x128xf32> to vector<8x128xf32>
    %56 = arith.mulf %50, %55 : vector<8x128xf32>
    %57 = arith.addf %42, %49 : vector<8x128xf32>
    %58 = vector.extract_strided_slice %39 {offsets = [0, 0], sizes = [8, 128], strides = [1, 1]} : vector<32x128xf32> to vector<8x128xf32>
    %59 = arith.mulf %57, %58 : vector<8x128xf32>
    %60 = arith.addf %56, %59 : vector<8x128xf32>
    %c4_i32 = arith.constant 4 : i32
    %61 = arith.muli %arg1, %c4_i32 : i32
    %c0_i32_32 = arith.constant 0 : i32
    %62 = arith.addi %61, %c0_i32_32 : i32
    %c10_i32 = arith.constant 10 : i32
    %63 = arith.cmpi slt, %62, %c10_i32 : i32
    %64 = arith.extui %63 : i1 to i32
    %65 = arith.sitofp %64 : i32 to f32
    %66 = vector.broadcast %65 : f32 to vector<8x128xf32>
    %67 = arith.mulf %66, %54 : vector<8x128xf32>
    %cst_33 = arith.constant 1.000000e+00 : f32
    %68 = arith.subf %cst_33, %65 : f32
    %69 = vector.broadcast %68 : f32 to vector<8x128xf32>
    %70 = arith.mulf %69, %49 : vector<8x128xf32>
    %71 = arith.addf %67, %70 : vector<8x128xf32>
    %72 = vector.broadcast %65 : f32 to vector<8x128xf32>
    %73 = arith.mulf %72, %60 : vector<8x128xf32>
    %cst_34 = arith.constant 1.000000e+00 : f32
    %74 = arith.subf %cst_34, %65 : f32
    %75 = vector.broadcast %74 : f32 to vector<8x128xf32>
    %76 = arith.mulf %75, %50 : vector<8x128xf32>
    %77 = arith.addf %73, %76 : vector<8x128xf32>
    %78 = vector.extract_strided_slice %33 {offsets = [0, 0], sizes = [8, 128], strides = [1, 1]} : vector<32x128xf32> to vector<8x128xf32>
    %79 = arith.mulf %71, %45 : vector<8x128xf32>
    %80 = arith.mulf %77, %48 : vector<8x128xf32>
    %81 = arith.addf %79, %80 : vector<8x128xf32>
    %82 = arith.mulf %78, %81 : vector<8x128xf32>
    %83 = math.tanh %82 : vector<8x128xf32>
    %c0_35 = arith.constant 0 : index
    %c0_36 = arith.constant 0 : index
    %84 = vector.load %arg5[%c0_35, %c0_36] : memref<32x128xf32, #tpu.memory_space<vmem>>, vector<8x128xf32>
    tpu.vector_store %arg5[%c0_35, %c0_36], %83 {strides = array<i32>} : memref<32x128xf32, #tpu.memory_space<vmem>>, vector<8x128xf32>,
    %85 = vector.extract_strided_slice %17 {offsets = [8, 0], sizes = [8, 128], strides = [1, 1]} : vector<32x128xf32> to vector<8x128xf32>
    %86 = arith.mulf %71, %85 : vector<8x128xf32>
    %87 = vector.extract_strided_slice %36 {offsets = [8, 0], sizes = [8, 128], strides = [1, 1]} : vector<32x128xf32> to vector<8x128xf32>
    %88 = arith.addf %86, %87 : vector<8x128xf32>
    %89 = vector.extract_strided_slice %25 {offsets = [8, 0], sizes = [8, 128], strides = [1, 1]} : vector<32x128xf32> to vector<8x128xf32>
    %90 = arith.mulf %77, %89 : vector<8x128xf32>
    %91 = arith.addf %42, %71 : vector<8x128xf32>
    %92 = vector.extract_strided_slice %39 {offsets = [8, 0], sizes = [8, 128], strides = [1, 1]} : vector<32x128xf32> to vector<8x128xf32>
    %93 = arith.mulf %91, %92 : vector<8x128xf32>
    %94 = arith.addf %90, %93 : vector<8x128xf32>
    %c4_i32_37 = arith.constant 4 : i32
    %95 = arith.muli %arg1, %c4_i32_37 : i32
    %c1_i32 = arith.constant 1 : i32
    %96 = arith.addi %95, %c1_i32 : i32
    %c10_i32_38 = arith.constant 10 : i32
    %97 = arith.cmpi slt, %96, %c10_i32_38 : i32
    %98 = arith.extui %97 : i1 to i32
    %99 = arith.sitofp %98 : i32 to f32
    %100 = vector.broadcast %99 : f32 to vector<8x128xf32>
    %101 = arith.mulf %100, %88 : vector<8x128xf32>
    %cst_39 = arith.constant 1.000000e+00 : f32
    %102 = arith.subf %cst_39, %99 : f32
    %103 = vector.broadcast %102 : f32 to vector<8x128xf32>
    %104 = arith.mulf %103, %71 : vector<8x128xf32>
    %105 = arith.addf %101, %104 : vector<8x128xf32>
    %106 = vector.broadcast %99 : f32 to vector<8x128xf32>
    %107 = arith.mulf %106, %94 : vector<8x128xf32>
    %cst_40 = arith.constant 1.000000e+00 : f32
    %108 = arith.subf %cst_40, %99 : f32
    %109 = vector.broadcast %108 : f32 to vector<8x128xf32>
    %110 = arith.mulf %109, %77 : vector<8x128xf32>
    %111 = arith.addf %107, %110 : vector<8x128xf32>
    %112 = vector.extract_strided_slice %33 {offsets = [8, 0], sizes = [8, 128], strides = [1, 1]} : vector<32x128xf32> to vector<8x128xf32>
    %113 = arith.mulf %105, %45 : vector<8x128xf32>
    %114 = arith.mulf %111, %48 : vector<8x128xf32>
    %115 = arith.addf %113, %114 : vector<8x128xf32>
    %116 = arith.mulf %112, %115 : vector<8x128xf32>
    %117 = math.tanh %116 : vector<8x128xf32>
    %c8 = arith.constant 8 : index
    %c0_41 = arith.constant 0 : index
    %118 = vector.load %arg5[%c8, %c0_41] : memref<32x128xf32, #tpu.memory_space<vmem>>, vector<8x128xf32>
    tpu.vector_store %arg5[%c8, %c0_41], %117 {strides = array<i32>} : memref<32x128xf32, #tpu.memory_space<vmem>>, vector<8x128xf32>,
    %119 = vector.extract_strided_slice %17 {offsets = [16, 0], sizes = [8, 128], strides = [1, 1]} : vector<32x128xf32> to vector<8x128xf32>
    %120 = arith.mulf %105, %119 : vector<8x128xf32>
    %121 = vector.extract_strided_slice %36 {offsets = [16, 0], sizes = [8, 128], strides = [1, 1]} : vector<32x128xf32> to vector<8x128xf32>
    %122 = arith.addf %120, %121 : vector<8x128xf32>
    %123 = vector.extract_strided_slice %25 {offsets = [16, 0], sizes = [8, 128], strides = [1, 1]} : vector<32x128xf32> to vector<8x128xf32>
    %124 = arith.mulf %111, %123 : vector<8x128xf32>
    %125 = arith.addf %42, %105 : vector<8x128xf32>
    %126 = vector.extract_strided_slice %39 {offsets = [16, 0], sizes = [8, 128], strides = [1, 1]} : vector<32x128xf32> to vector<8x128xf32>
    %127 = arith.mulf %125, %126 : vector<8x128xf32>
    %128 = arith.addf %124, %127 : vector<8x128xf32>
    %c4_i32_42 = arith.constant 4 : i32
    %129 = arith.muli %arg1, %c4_i32_42 : i32
    %c2_i32 = arith.constant 2 : i32
    %130 = arith.addi %129, %c2_i32 : i32
    %c10_i32_43 = arith.constant 10 : i32
    %131 = arith.cmpi slt, %130, %c10_i32_43 : i32
    %132 = arith.extui %131 : i1 to i32
    %133 = arith.sitofp %132 : i32 to f32
    %134 = vector.broadcast %133 : f32 to vector<8x128xf32>
    %135 = arith.mulf %134, %122 : vector<8x128xf32>
    %cst_44 = arith.constant 1.000000e+00 : f32
    %136 = arith.subf %cst_44, %133 : f32
    %137 = vector.broadcast %136 : f32 to vector<8x128xf32>
    %138 = arith.mulf %137, %105 : vector<8x128xf32>
    %139 = arith.addf %135, %138 : vector<8x128xf32>
    %140 = vector.broadcast %133 : f32 to vector<8x128xf32>
    %141 = arith.mulf %140, %128 : vector<8x128xf32>
    %cst_45 = arith.constant 1.000000e+00 : f32
    %142 = arith.subf %cst_45, %133 : f32
    %143 = vector.broadcast %142 : f32 to vector<8x128xf32>
    %144 = arith.mulf %143, %111 : vector<8x128xf32>
    %145 = arith.addf %141, %144 : vector<8x128xf32>
    %146 = vector.extract_strided_slice %33 {offsets = [16, 0], sizes = [8, 128], strides = [1, 1]} : vector<32x128xf32> to vector<8x128xf32>
    %147 = arith.mulf %139, %45 : vector<8x128xf32>
    %148 = arith.mulf %145, %48 : vector<8x128xf32>
    %149 = arith.addf %147, %148 : vector<8x128xf32>
    %150 = arith.mulf %146, %149 : vector<8x128xf32>
    %151 = math.tanh %150 : vector<8x128xf32>
    %c16 = arith.constant 16 : index
    %c0_46 = arith.constant 0 : index
    %152 = vector.load %arg5[%c16, %c0_46] : memref<32x128xf32, #tpu.memory_space<vmem>>, vector<8x128xf32>
    tpu.vector_store %arg5[%c16, %c0_46], %151 {strides = array<i32>} : memref<32x128xf32, #tpu.memory_space<vmem>>, vector<8x128xf32>,
    %153 = vector.extract_strided_slice %17 {offsets = [24, 0], sizes = [8, 128], strides = [1, 1]} : vector<32x128xf32> to vector<8x128xf32>
    %154 = arith.mulf %139, %153 : vector<8x128xf32>
    %155 = vector.extract_strided_slice %36 {offsets = [24, 0], sizes = [8, 128], strides = [1, 1]} : vector<32x128xf32> to vector<8x128xf32>
    %156 = arith.addf %154, %155 : vector<8x128xf32>
    %157 = vector.extract_strided_slice %25 {offsets = [24, 0], sizes = [8, 128], strides = [1, 1]} : vector<32x128xf32> to vector<8x128xf32>
    %158 = arith.mulf %145, %157 : vector<8x128xf32>
    %159 = arith.addf %42, %139 : vector<8x128xf32>
    %160 = vector.extract_strided_slice %39 {offsets = [24, 0], sizes = [8, 128], strides = [1, 1]} : vector<32x128xf32> to vector<8x128xf32>
    %161 = arith.mulf %159, %160 : vector<8x128xf32>
    %162 = arith.addf %158, %161 : vector<8x128xf32>
    %c4_i32_47 = arith.constant 4 : i32
    %163 = arith.muli %arg1, %c4_i32_47 : i32
    %c3_i32 = arith.constant 3 : i32
    %164 = arith.addi %163, %c3_i32 : i32
    %c10_i32_48 = arith.constant 10 : i32
    %165 = arith.cmpi slt, %164, %c10_i32_48 : i32
    %166 = arith.extui %165 : i1 to i32
    %167 = arith.sitofp %166 : i32 to f32
    %168 = vector.broadcast %167 : f32 to vector<8x128xf32>
    %169 = arith.mulf %168, %156 : vector<8x128xf32>
    %cst_49 = arith.constant 1.000000e+00 : f32
    %170 = arith.subf %cst_49, %167 : f32
    %171 = vector.broadcast %170 : f32 to vector<8x128xf32>
    %172 = arith.mulf %171, %139 : vector<8x128xf32>
    %173 = arith.addf %169, %172 : vector<8x128xf32>
    %174 = vector.broadcast %167 : f32 to vector<8x128xf32>
    %175 = arith.mulf %174, %162 : vector<8x128xf32>
    %cst_50 = arith.constant 1.000000e+00 : f32
    %176 = arith.subf %cst_50, %167 : f32
    %177 = vector.broadcast %176 : f32 to vector<8x128xf32>
    %178 = arith.mulf %177, %145 : vector<8x128xf32>
    %179 = arith.addf %175, %178 : vector<8x128xf32>
    %180 = vector.extract_strided_slice %33 {offsets = [24, 0], sizes = [8, 128], strides = [1, 1]} : vector<32x128xf32> to vector<8x128xf32>
    %181 = arith.mulf %173, %45 : vector<8x128xf32>
    %182 = arith.mulf %179, %48 : vector<8x128xf32>
    %183 = arith.addf %181, %182 : vector<8x128xf32>
    %184 = arith.mulf %180, %183 : vector<8x128xf32>
    %185 = math.tanh %184 : vector<8x128xf32>
    %c24 = arith.constant 24 : index
    %c0_51 = arith.constant 0 : index
    %186 = vector.load %arg5[%c24, %c0_51] : memref<32x128xf32, #tpu.memory_space<vmem>>, vector<8x128xf32>
    tpu.vector_store %arg5[%c24, %c0_51], %185 {strides = array<i32>} : memref<32x128xf32, #tpu.memory_space<vmem>>, vector<8x128xf32>,
    %c0_52 = arith.constant 0 : index
    %c0_53 = arith.constant 0 : index
    %187 = vector.load %arg8[%c0_52, %c0_53] : memref<8x128xf32, #tpu.memory_space<vmem>>, vector<8x128xf32>
    tpu.vector_store %arg8[%c0_52, %c0_53], %173 {strides = array<i32>} : memref<8x128xf32, #tpu.memory_space<vmem>>, vector<8x128xf32>,
    %c0_54 = arith.constant 0 : index
    %c0_55 = arith.constant 0 : index
    %188 = vector.load %arg9[%c0_54, %c0_55] : memref<8x128xf32, #tpu.memory_space<vmem>>, vector<8x128xf32>
    tpu.vector_store %arg9[%c0_54, %c0_55], %179 {strides = array<i32>} : memref<8x128xf32, #tpu.memory_space<vmem>>, vector<8x128xf32>,
    %c2_i32_56 = arith.constant 2 : i32
    %189 = arith.cmpi eq, %arg1, %c2_i32_56 : i32
    %190 = arith.extui %189 : i1 to i32
    %c0_i32_57 = arith.constant 0 : i32
    %191 = arith.cmpi ne, %190, %c0_i32_57 : i32
    scf.if %191 {
      %c0_58 = arith.constant 0 : index
      %c0_59 = arith.constant 0 : index
      %192 = vector.load %arg6[%c0_58, %c0_59] : memref<8x128xf32, #tpu.memory_space<vmem>>, vector<8x128xf32>
      tpu.vector_store %arg6[%c0_58, %c0_59], %173 {strides = array<i32>} : memref<8x128xf32, #tpu.memory_space<vmem>>, vector<8x128xf32>,
      %c0_60 = arith.constant 0 : index
      %c0_61 = arith.constant 0 : index
      %193 = vector.load %arg7[%c0_60, %c0_61] : memref<8x128xf32, #tpu.memory_space<vmem>>, vector<8x128xf32>
      tpu.vector_store %arg7[%c0_60, %c0_61], %179 {strides = array<i32>} : memref<8x128xf32, #tpu.memory_space<vmem>>, vector<8x128xf32>,
    } else {
    }
    return
  }
  func.func @transform_0(%arg0: i32, %arg1: i32) -> (i32, i32) {
    %c0_i32 = arith.constant 0 : i32
    %c0_i32_0 = arith.constant 0 : i32
    return %arg1, %c0_i32 : i32, i32
  }
  func.func @transform_1(%arg0: i32, %arg1: i32) -> (i32, i32, i32) {
    %c0_i32 = arith.constant 0 : i32
    %c0_i32_0 = arith.constant 0 : i32
    %c0_i32_1 = arith.constant 0 : i32
    return %c0_i32, %c0_i32_0, %arg0 : i32, i32, i32
  }
  func.func @transform_2(%arg0: i32, %arg1: i32) -> (i32, i32) {
    %c0_i32 = arith.constant 0 : i32
    %c0_i32_0 = arith.constant 0 : i32
    return %c0_i32, %arg0 : i32, i32
  }
  func.func @transform_3(%arg0: i32, %arg1: i32) -> (i32, i32) {
    %c0_i32 = arith.constant 0 : i32
    return %arg1, %arg0 : i32, i32
  }
  func.func @transform_4(%arg0: i32, %arg1: i32) -> (i32, i32) {
    %c0_i32 = arith.constant 0 : i32
    %c0_i32_0 = arith.constant 0 : i32
    return %c0_i32, %arg0 : i32, i32
  }
  func.func @transform_5(%arg0: i32, %arg1: i32) -> (i32, i32) {
    %c0_i32 = arith.constant 0 : i32
    %c0_i32_0 = arith.constant 0 : i32
    return %c0_i32, %arg0 : i32, i32
  }
}

</mosaic_0001>

<bundles_post_ra>
// kernel: tpu_custom_call.1
= control target key start
LH: loop header
LB: loop body
LE: loop exit
PB: predicated region body
PF: predicated region fallthrough
CT: control target
= control target key end

     0   :  { %11 = vsyncpa [#allocation5], 0  ;;  %s2026_s0 = inlined_call_operand.vmem [shape: bf16[96,17], index: 0, kind: input, shape index: {}]   ;;  %s2027_s1 = inlined_call_operand.vmem [shape: bf16[5,17,128], index: 1, kind: input, shape index: {}]   ;;  %s2028_s2 = inlined_call_operand.hbm [shape: f32[3,128], index: 2, kind: input, shape index: {}]   ;;  %s2029_s3 = inlined_call_operand.hbm [shape: f32[96,128], index: 3, kind: output, shape index: {0}]   ;;  %s2030_s4 = inlined_call_operand.hbm [shape: f32[8,128], index: 4, kind: output, shape index: {1}]   ;;  %s2031_s5 = inlined_call_operand.hbm [shape: f32[8,128], index: 5, kind: output, shape index: {2}]  }
   0x1   :  { %12 = vsyncpa [#allocation6], 0 }
   0x2   :  { %14 = vsyncpa [#allocation6 + $0x1], 0 }
   0x3   :  { %15 = vsyncpa [#allocation9], 0  ;;  %s1472_s18 = smov 0   ;;  %s1474_s19 = smov 0  }
   0x4   :  { %s1476_s20 = smov 0   ;;  %s1478_s21 = smov 0  }
   0x5   :  { %s1480_s22 = smov 0   ;;  %s1482_s23 = smov 0  }
   0x6 LB: > { %s1023_s24 = sadd.s32 4294967295, %s1433_s23   ;;  %s1024_s25 = sadd.s32 4294967294, %s1433_s23   ;;  %s1433_s23 = sphi %s1482_s23, %s21_s23   ;;  %s1429_s22 = sphi %s1480_s22, %s2064_s22   ;;  %s1425_s21 = sphi %s1478_s21, %s2063_s21   ;;  %s1421_s20 = sphi %s1476_s20, %s2062_s20   ;;  %s1417_s19 = sphi %s1474_s19, %s2061_s19   ;;  %s1413_s18 = sphi %s1472_s18, %s2060_s18  }
   0x7   : > { %s30_s26 = sadd.s32 1, %s1429_s22  ;;  %s120_s27 = sadd.s32 1, %s1421_s20 }
   0x8   : > { %p31_p0 = scmp.ge.s32.totalorder %s30_s26, 3  ;;  %p130_p1 = scmp.ne.s32.totalorder %s1421_s20, %s1417_s19 }
   0x9   : > { %p1508_p2 = scmp.eq.s32.totalorder %s1023_s24, 2  ;;  %p136_p3 = scmp.ne.s32.totalorder %s1417_s19, %s1413_s18 }
   0xa   : > { %s2066_s26 = smov (%p31_p0, %s30_s26), 0  ;;  %p137_p5 = scmp.eq.s32.totalorder %s1024_s25, 2 }
   0xb   : > { %p1518_p4 = por %p1508_p2, %p130_p1  ;;  %s115_s30 = ssub.s32 %s1429_s22, %s2066_s26 }
   0xc   : > { %p1025_p6 = scmp.ge.s32.totalorder %s1433_s23, 1  ;;  %p118_p7 = scmp.eq.s32.totalorder %s115_s30, 0 }
   0xd   : > { %p1525_p8 = por %p137_p5, %p136_p3  ;;  %p196_p9 = scmp.lt.s32.totalorder %s1433_s23, 4 }
   0xe   : > { %s1531_s7 = scalar_select %p118_p7, %s1421_s20, %s120_s27  }
   0xf   : > { %p197_p10 = pnand %p1025_p6, %p196_p9  ;;  %p1140_p11 = scmp.eq.s32.totalorder %s1023_s24, 0 }
  0x10   : > { %s217_s10 = sshll.u32 %s2028_s2, 4  ;;  %s1435_s11 = smov [#allocation4]   ;;  %s218_s10 = int_to_ptr.hbm [resolvable:$true] %s217_s10 }
  0x11   : > { %p1132_p12 = pneg %p197_p10  ;;  %s219_s12 = sshll.u32 %s1435_s11, 4  ;;  %s220_s12 = int_to_ptr.vmem [resolvable:$true] %s219_s12 }
  0x12   : > { %241 = sbr.rel (%p197_p10) target bundleno = 305 (0x131), region = 32 }
  0x13   : > { %p1133_p13 = pnand %p1140_p11, %p1132_p12 }
  0x15   : > { %1135 = dma.hbm_to_vmem [thread:$0]  (!%p1133_p13), %s218_s10, 64, %s220_s12, [#allocation5]  }
  0x17   : > { %1400 = dma.done.wait (%p1140_p11), [#allocation5], 64  }
  0x18   : > { %1402 = vsyncadd (%p1140_p11), [#allocation5], 4294967232  ;;  %s267_s13 = sand.u32 1, %s1417_s19   ;;  %s1538_s14 = sshll.u32 %s1425_s21, 2 }
  0x19   : > { %s1031_s15 = sshll.u32 %s267_s13, 5  ;;  %p275_p0 = scmp.lt.s32.totalorder %s1538_s14, 11 }
  0x1a   : > { %s1549_s30 = scalar_lea.vmem [#allocation7], %s1031_s15  ;;  %p1034_p1 = scmp.ne.s32.totalorder %s1425_s21, 0 }
  0x1b   : > { %s276_s16 = scalar_select %p275_p0, %s1538_s14, 11 }
  0x1c   : > { %289 = sbr.rel (%p1034_p1) target bundleno = 36 (0x24), region = 40 }
  0x1d   : > { %s1033_s17 = sshll.u32 %s276_s16, 2 }
  0x1e   : > { %s1547_s27 = scalar_lea.vmem %s2026_s0, %s1033_s17 }
  0x21   : > { %v1436_v0 = vmov 0.0  }
  0x22   : > { %290 = vst [vmem:[#allocation2] sm:$0xff] %v1436_v0 }
  0x23   : > { %291 = vst [vmem:[#allocation3] sm:$0xff] %v1436_v0 }
  0x24 PF: > { %v298_v1 = vld [vmem:[%s2027_s1 + $0x8] sm:$0x1]  ;;  %vm325_vm0 = vcmask 1040384   ;;  %v1060_v2 = vld [vmem:[%s2027_s1 + $0x20] sm:$0x1]  ;;  %v1437_v6 = vmov 0  }
  0x25   : > { %v314_v3 = vunpack.c.l.b16 %v298_v1  ;;  %v394_v4 = vunpack.c.l.b16 %v1060_v2  ;;  %v1073_v5 = vld [vmem:[%s2027_s1 + $0x2c] sm:$0x1]  ;;  %v327_v7 = vsel %vm325_vm0, 65535, %v1437_v6  ;;  %v1086_v9 = vld [vmem:[%s2027_s1 + $0x38] sm:$0x1]  ;;  %v1110_v20 = vld [vmem:[%s2027_s1] sm:$0xff] }
  0x26   : > { %v505_v8 = vunpack.c.l.b16 %v1073_v5  ;;  %v616_v12 = vunpack.c.l.b16 %v1086_v9  ;;  %v1051_v13 = vld [vmem:[%s2027_s1 + $0x14] sm:$0x1]  ;;  %v1112_v21 = vld [vmem:[%s2027_s1 + $0x18] sm:$0xff]  ;;  %v1113_v23 = vld [vmem:[%s2027_s1 + $0x24] sm:$0xff]  ;;  %vm318_vm1 = vcmask 138240   ;;  %p749_p3 = scmp.lt.s32.totalorder %s1538_s14, 10 }
  0x27   : > { %v316_v10 = vpack.c.b16 %v314_v3, %v314_v3  ;;  %v396_v11 = vpack.c.b16 %v394_v4, %v394_v4  ;;  %v359_v15 = vunpack.c.l.b16 %v1051_v13  ;;  %v1108_v25 = vld [vmem:[%s1547_s27] sm:$0xff]  ;;  %v1109_v27 = vld [vmem:[%s1547_s27 + $0x8] sm:$0xff]  ;;  %v1114_v28 = vld [vmem:[%s2027_s1 + $0x30] sm:$0xff]  ;;  %s773_s10 = sadd.s32 1, %s1538_s14  ;;  %s798_s16 = sadd.s32 2, %s1538_s14 }
  0x28   : > { %v507_v14 = vpack.c.b16 %v505_v8, %v505_v8  ;;  %v618_v18 = vpack.c.b16 %v616_v12, %v616_v12  ;;  %v1111_v29 = vld [vmem:[%s2027_s1 + $0xc] sm:$0xff]  ;;  %s1599_s27 = scalar_select %p749_p3, 1, 0 }
  0x29   : > { %v329_v16 = vand.u32 %v327_v7, %v316_v10  ;;  %v399_v17 = vand.u32 %v396_v11, %v327_v7  ;;  %v361_v22 = vpack.c.b16 %v359_v15, %v359_v15  ;;  %v1612_v50 = vld [vmem:[#allocation4] ss:$0 sm:$0xff]  ;;  %v1620_v58 = vld [vmem:[#allocation2] sm:$0xff]  ;;  %p1715_p5 = scmp.lt.s32.totalorder %s773_s10, 10  ;;  %p1808_p6 = scmp.lt.s32.totalorder %s798_s16, 10 }
  0x2a   : > { %v510_v19 = vand.u32 %v507_v14, %v327_v7  ;;  %v621_v24 = vand.u32 %v618_v18, %v327_v7  ;;  %s751_s8 = scvt.s32.f32 %s1599_s27  ;;  %v1627_v63 = vadd.f32 %v1612_v50, %v1620_v58  ;;  %v1634_v6 = vld [vmem:[#allocation3] sm:$0xff]  ;;  %p1098_p9 = scmp.ne.s32.totalorder %s1425_s21, 2 }
  0x2b   : > { %337 = vmatpush.bf16.msra.mxu0 %v329_v16  ;;  %407 = vmatpush.bf16.msra.mxu2 %v399_v17  ;;  %v364_v26 = vand.u32 %v361_v22, %v327_v7  ;;  %s775_s12 = scalar_select %p1715_p5, 1, 0 }
  0x2c   : > { %518 = vmatpush.bf16.msra.mxu3 %v510_v19  ;;  %1116 = vmatpush.bf16.msra.mxu1 %v329_v16  ;;  %s1610_s9 = ssub.f32 1.0, %s751_s8  ;;  %v1632_v3 = vstv %s751_s8  ;;  %s823_s8 = sadd.s32 3, %s1538_s14 }
  0x2d   : > { %s1787_s15 = scvt.s32.f32 %s775_s12  ;;  %p1888_p7 = scmp.lt.s32.totalorder %s823_s8, 10 }
  0x2e   : > { %v755_v59 = vstv %s1610_s9  ;;  %s800_s25 = scalar_select %p1808_p6, 1, 0 }
  0x2f   : > { %338 = vmatpush.bf16.msra.mxu0 %v1110_v20  ;;  %408 = vmatpush.bf16.msra.mxu2 %v1112_v21  ;;  %v1637_v7 = vmul.f32 %v755_v59, %v1620_v58  ;;  %v1643_v10 = vmul.f32 %v755_v59, %v1634_v6  ;;  %s779_s24 = ssub.f32 1.0, %s1787_s15 }
  0x30   : > { %519 = vmatpush.bf16.msra.mxu3 %v1113_v23  ;;  %1117 = vmatpush.bf16.msra.mxu1 %v1110_v20  ;;  %s1862_s27 = scvt.s32.f32 %s800_s25 }
  0x31   : > { %s825_s10 = scalar_select %p1888_p7, 1, 0 }
  0x32   : > { %1047 = vmatmul.msk.bf16.vlgmr.msra.gmra.mxu0 %vm318_vm1, %v1108_v25  ;;  %1065 = vmatmul.msk.bf16.vlgmr.msra.gmra.mxu2 %vm318_vm1, %v1108_v25  ;;  %s804_s9 = ssub.f32 1.0, %s1862_s27 }
  0x33   : > { %629 = vmatpush.bf16.msrb.mxu0 %v621_v24  ;;  %1078 = vmatmul.msk.bf16.vlgmr.msra.gmra.mxu3 %vm318_vm1, %v1108_v25  ;;  %s1925_s11 = scvt.s32.f32 %s825_s10 }
  0x34   : > { %372 = vmatpush.bf16.msrb.mxu1 %v364_v26 }
  0x35   : > { %1048 = vmatmul.msk.bf16.vlgmr.msra.gmra.mxu1 %vm318_vm1, %v1109_v27  ;;  %s829_s12 = ssub.f32 1.0, %s1925_s11 }
  0x37   : > { %630 = vmatpush.bf16.msrb.mxu0 %v1114_v28 }
  0x38   : > { %373 = vmatpush.bf16.msrb.mxu1 %v1111_v29 }
  0x42   : > { %1066 = vmatmul.msk.bf16.gmra.mxu2 %vm318_vm1, %v1109_v27  ;;  %1091 = vmatmul.msk.bf16.vlgmr.msrb.gmra.mxu0 %vm318_vm1, %v1108_v25 }
  0x43   : > { %1079 = vmatmul.msk.bf16.gmra.mxu3 %vm318_vm1, %v1109_v27 }
  0x45   : > { %1056 = vmatmul.msk.bf16.vlgmr.msrb.gmra.mxu1 %vm318_vm1, %v1108_v25 }
  0x52   : > { %1092 = vmatmul.msk.bf16.gmra.mxu0 %vm318_vm1, %v1109_v27 }
  0x55   : > { %1057 = vmatmul.msk.bf16.gmra.mxu1 %vm318_vm1, %v1109_v27  ;;  %v1754_v27 = vld [vmem:[#allocation4 + $0x1] ss:$0 sm:$0xff] }
  0xaf   : > { %v1594_v30 = vpop.f32.mrf.mxu0 }
  0xb2   : > { %v1608_v46 = vpop.f32.mrf.mxu1 }
  0xb5   : > { %v410_v31 = vpop.f32.mrf.mxu2 }
  0xb6   : > { %v1067_v32 = vmul.f32 -1.442695, %v410_v31  ;;  %v521_v33 = vpop.f32.mrf.mxu3 }
  0xb7   : > { %v1080_v34 = vmul.f32 -1.442695, %v521_v33  ;;  %v1596_v35 = vpop.f32.mrf.mxu0 }
  0xb8   : > { %1205 = vpow2.f32 %v1067_v32 }
  0xb9   : > { %1207 = vpow2.f32 %v1080_v34 }
  0xba   : > { %v1648_v14 = vpop.f32.mrf.mxu1 }
  0xbd   : > { %v412_v36 = vpop.f32.mrf.mxu2 }
  0xbe   : > { %v1206_v37 = vpop.eup %1205  ;;  %v1068_v38 = vmul.f32 -1.442695, %v412_v36  ;;  %v523_v39 = vpop.f32.mrf.mxu3 }
  0xbf   : > { %v1208_v40 = vpop.eup %1207  ;;  %v1601_v41 = vadd.f32 1.0, %v1206_v37  ;;  %v632_v42 = vpop.f32.mrf.mxu0  ;;  %v1081_v45 = vmul.f32 -1.442695, %v523_v39 }
  0xc0   : > { %v1603_v43 = vadd.f32 1.0, %v1208_v40  ;;  %1209 = vpow2.f32 %v1068_v38  ;;  %v1093_v44 = vmul.f32 -1.442695, %v632_v42 }
  0xc1   : > { %1211 = vrcp.f32 %v1601_v41  ;;  %v447_v1 = vand.u32 2147483648, %v1601_v41  ;;  %v445_v8 = vand.u32 2147483647, %v1601_v41  ;;  %vm441_vm3 = vweird.f32 %v1601_v41 }
  0xc2   : > { %1213 = vrcp.f32 %v1603_v43  ;;  %v556_v9 = vand.u32 2147483647, %v1603_v43  ;;  %v558_v20 = vand.u32 2147483648, %v1603_v43  ;;  %vm552_vm7 = vweird.f32 %v1603_v43  ;;  %v375_v59 = vpop.f32.mrf.mxu1 }
  0xc3   : > { %1215 = vpow2.f32 %v1093_v44  ;;  %v448_v18 = vor.u32 1.1754944e-38, %v447_v1  ;;  %vm446_vm6 = vcmp.eq.f32.partialorder %v445_v8, 8.507059e+37 }
  0xc4   : > { %1217 = vpow2.f32 %v1081_v45  ;;  %vm1669_vm8 = vcmp.eq.f32.partialorder %v556_v9, 8.507059e+37  ;;  %v559_v42 = vor.u32 1.1754944e-38, %v558_v20 }
  0xc5   : > { %v415_v47 = vpop.f32.mrf.mxu2 }
  0xc6   : > { %v1210_v48 = vpop.eup %1209  ;;  %v1069_v49 = vmul.f32 -1.442695, %v415_v47  ;;  %v526_v56 = vpop.f32.mrf.mxu3 }
  0xc7   : > { %v1212_v51 = vpop.eup %1211  ;;  %v1614_v52 = vadd.f32 1.0, %v1210_v48  ;;  %v634_v53 = vpop.f32.mrf.mxu0  ;;  %v1082_v22 = vmul.f32 -1.442695, %v526_v56 }
  0xc8   : > { %v1616_v54 = vpop.eup %1213  ;;  %v437_v55 = vmul.f32 %v1212_v51, %v1601_v41  ;;  %1219 = vpow2.f32 %v1069_v49  ;;  %v1094_v57 = vmul.f32 -1.442695, %v634_v53  ;;  %vm442_vm2 = vweird.f32 %v1212_v51 }
  0xc9   : > { %1221 = vrcp.f32 %v1614_v52  ;;  %v1216_v60 = vpop.eup %1215  ;;  %v548_v62 = vmul.f32 %v1616_v54, %v1603_v43  ;;  %vm1654_vm4 = vmor %vm441_vm3, %vm442_vm2  ;;  %vm553_vm5 = vweird.f32 %v1616_v54  ;;  %v460_v26 = vand.u32 2147483647, %v1614_v52 }
  0xca   : > { %v438_v61 = vsub.f32 1.0, %v437_v55  ;;  %v1218_v0 = vpop.eup %1217  ;;  %v1630_v2 = vadd.f32 1.0, %v1216_v60  ;;  %1223 = vpow2.f32 %v1094_v57  ;;  %vm1678_vm9 = vmor %vm552_vm7, %vm553_vm5  ;;  %v462_v37 = vand.u32 2147483648, %v1614_v52 }
  0xcb   : > { %v549_v5 = vsub.f32 1.0, %v548_v62  ;;  %v1646_v13 = vadd.f32 1.0, %v1218_v0  ;;  %vm456_vm10 = vweird.f32 %v1614_v52  ;;  %vm1699_vm12 = vcmp.eq.f32.partialorder %v460_v26, 8.507059e+37 }
  0xcc   : > { %v439_v4 = vmul.f32 %v1212_v51, %v438_v61  ;;  %1225 = vrcp.f32 %v1630_v2  ;;  %v463_v53 = vor.u32 1.1754944e-38, %v462_v37  ;;  %vm663_vm11 = vweird.f32 %v1630_v2 }
  0xcd   : > { %v550_v15 = vmul.f32 %v1616_v54, %v549_v5  ;;  %1227 = vrcp.f32 %v1646_v13  ;;  %v417_v33 = vpop.f32.mrf.mxu2  ;;  %v667_v61 = vand.u32 2147483647, %v1630_v2  ;;  %vm567_vm15 = vweird.f32 %v1646_v13 }
  0xce   : > { %v1220_v11 = vpop.eup %1219  ;;  %v440_v12 = vadd.f32 %v1212_v51, %v439_v4  ;;  %v528_v34 = vpop.f32.mrf.mxu3  ;;  %v1070_v43 = vmul.f32 -1.442695, %v417_v33 }
  0xcf   : > { %v1651_v16 = vpop.eup %1221  ;;  %v1658_v19 = vadd.f32 1.0, %v1220_v11  ;;  %v551_v24 = vadd.f32 %v1616_v54, %v550_v15  ;;  %v1083_v44 = vmul.f32 -1.442695, %v528_v34  ;;  %vm1739_vm0 = vcmp.eq.f32.partialorder %v667_v61, 8.507059e+37 }
  0xd0   : > { %v452_v21 = vmul.f32 %v1651_v16, %v1614_v52  ;;  %v444_v23 = vsel %vm1654_vm4, %v1212_v51, %v440_v12  ;;  %v1224_v25 = vpop.eup %1223  ;;  %v637_v51 = vpop.f32.mrf.mxu0  ;;  %vm457_vm13 = vweird.f32 %v1651_v16 }
  0xd1   : > { %v1674_v29 = vadd.f32 1.0, %v1224_v25  ;;  %v449_v31 = vsel %vm446_vm6, %v448_v18, %v444_v23  ;;  %1229 = vrcp.f32 %v1658_v19  ;;  %v555_v38 = vsel %vm1678_vm9, %v1616_v54, %v551_v24  ;;  %vm1725_vm14 = vmor %vm456_vm10, %vm457_vm13 }
  0xd2   : > { %v453_v28 = vsub.f32 1.0, %v452_v21  ;;  %v1682_v36 = vpop.eup %1225  ;;  %v718_v39 = vsub.f32 1.0, %v449_v31  ;;  %1231 = vpow2.f32 %v1082_v22  ;;  %v560_v47 = vsel %vm1669_vm8, %v559_v42, %v555_v38 }
  0xd3   : > { %v659_v41 = vmul.f32 %v1682_v36, %v1630_v2  ;;  %1233 = vrcp.f32 %v1674_v29  ;;  %v742_v49 = vmul.f32 %v1620_v58, %v449_v31  ;;  %v726_v54 = vsub.f32 1.0, %v560_v47  ;;  %v1704_v56 = vpop.eup %1227 }
  0xd4   : > { %v454_v40 = vmul.f32 %v1651_v16, %v453_v28  ;;  %v722_v48 = vmul.f32 %v718_v39, %v1594_v30  ;;  %v669_v30 = vand.u32 2147483648, %v1630_v2  ;;  %1235 = vpow2.f32 %v1070_v43  ;;  %v1756_v28 = vld [vmem:[#allocation4 + $0x2] ss:$0 sm:$0xff] }
  0xd5   : > { %v660_v45 = vsub.f32 1.0, %v659_v41  ;;  %v730_v62 = vmul.f32 %v726_v54, %v375_v59  ;;  %v1095_v0 = vmul.f32 -1.442695, %v637_v51  ;;  %v477_v5 = vand.u32 2147483648, %v1658_v19 }
  0xd6   : > { %v455_v57 = vadd.f32 %v1651_v16, %v454_v40  ;;  %v743_v58 = vadd.f32 %v742_v49, %v722_v48  ;;  %v744_v8 = vmul.f32 %v1634_v6, %v560_v47  ;;  %1237 = vpow2.f32 %v1083_v44 }
  0xd7   : > { %v1709_v60 = vpop.eup %1229  ;;  %v661_v4 = vmul.f32 %v1682_v36, %v660_v45  ;;  %v746_v12 = vmul.f32 %v1627_v63, %v730_v62  ;;  %1239 = vpow2.f32 %v1095_v0  ;;  %v563_v6 = vmul.f32 %v1704_v56, %v1646_v13 }
  0xd8   : > { %v1232_v1 = vpop.eup %1231  ;;  %v753_v15 = vmul.f32 %v1632_v3, %v743_v58  ;;  %v670_v17 = vor.u32 1.1754944e-38, %v669_v30  ;;  %v467_v18 = vmul.f32 %v1709_v60, %v1658_v19  ;;  %v459_v52 = vsel %vm1725_vm14, %v1651_v16, %v455_v57 }
  0xd9   : > { %v1719_v9 = vpop.eup %1233  ;;  %v475_v63 = vand.u32 2147483647, %v1658_v19  ;;  %v1744_v21 = vadd.f32 1.0, %v1232_v1  ;;  %v747_v22 = vadd.f32 %v746_v12, %v744_v8  ;;  %v564_v23 = vsub.f32 1.0, %v563_v6  ;;  %v639_v1 = vpop.f32.mrf.mxu0 }
  0xda   : > { %v662_v24 = vadd.f32 %v1682_v36, %v661_v4  ;;  %vm664_vm1 = vweird.f32 %v1682_v36  ;;  %v1748_v25 = vor.u32 1.1754944e-38, %v477_v5  ;;  %v674_v16 = vmul.f32 %v1719_v9, %v1674_v29  ;;  %v1236_v26 = vpop.eup %1235  ;;  %v377_v8 = vpop.f32.mrf.mxu1 }
  0xdb   : > { %v1759_v31 = vadd.f32 %v1637_v7, %v753_v15  ;;  %v758_v32 = vmul.f32 %v1632_v3, %v747_v22  ;;  %v464_v33 = vsel %vm1699_vm12, %v463_v53, %v459_v52  ;;  %v565_v34 = vmul.f32 %v1704_v56, %v564_v23  ;;  %vm1773_vm3 = vmor %vm663_vm11, %vm664_vm1 }
  0xdc   : > { %v1238_v37 = vpop.eup %1237  ;;  %v468_v38 = vsub.f32 1.0, %v467_v18  ;;  %v1765_v39 = vadd.f32 1.0, %v1236_v26  ;;  %vm568_vm2 = vweird.f32 %v1704_v56  ;;  %v573_v40 = vand.u32 2147483648, %v1646_v13 }
  0xdd   : > { %v1240_v41 = vpop.eup %1239  ;;  %1241 = vrcp.f32 %v1744_v21  ;;  %v1779_v7 = vadd.f32 %v1643_v10, %v758_v32  ;;  %v566_v42 = vadd.f32 %v1704_v56, %v565_v34  ;;  %v571_v43 = vand.u32 2147483647, %v1646_v13  ;;  %vm569_vm5 = vmor %vm567_vm15, %vm568_vm2 }
  0xde   : > { %v666_v44 = vsel %vm1773_vm3, %v1682_v36, %v662_v24  ;;  %v675_v45 = vsub.f32 1.0, %v674_v16  ;;  %1243 = vrcp.f32 %v1765_v39  ;;  %v719_v2 = vsub.f32 1.0, %v464_v33 }
  0xdf   : > { %vm471_vm4 = vweird.f32 %v1658_v19  ;;  %v761_v10 = vmul.f32 %v1754_v27, %v1759_v31  ;;  %v762_v47 = vmul.f32 %v1756_v28, %v1779_v7  ;;  %v1795_v48 = vadd.f32 1.0, %v1238_v37 }
  0xe0   : > { %v1797_v49 = vadd.f32 1.0, %v1240_v41  ;;  %v469_v36 = vmul.f32 %v1709_v60, %v468_v38  ;;  %v682_v51 = vand.u32 2147483647, %v1674_v29  ;;  %v570_v53 = vsel %vm569_vm5, %v1704_v56, %v566_v42 }
  0xe1   : > { %v574_v54 = vor.u32 1.1754944e-38, %v573_v40  ;;  %v684_v55 = vand.u32 2147483648, %v1674_v29  ;;  %v763_v57 = vadd.f32 %v762_v47, %v761_v10  ;;  %vm572_vm6 = vcmp.eq.f32.partialorder %v571_v43, 8.507059e+37 }
  0xe2   : > { %1245 = vrcp.f32 %v1797_v49  ;;  %v676_v13 = vmul.f32 %v1719_v9, %v675_v45  ;;  %v671_v30 = vsel %vm1739_vm0, %v670_v17, %v666_v44  ;;  %v723_v58 = vmul.f32 %v719_v2, %v1596_v35 }
  0xe3   : > { %v575_v59 = vsel %vm572_vm6, %v574_v54, %v570_v53  ;;  %v1817_v56 = vpop.eup %1241  ;;  %v764_v61 = vmul.f32 %v763_v57, %v671_v30  ;;  %1247 = vrcp.f32 %v1795_v48  ;;  %v767_v0 = vmul.f32 %v1759_v31, %v464_v33 }
  0xe4   : > { %v727_v62 = vsub.f32 1.0, %v575_v59  ;;  %v1821_v4 = vpop.eup %1243  ;;  %v470_v5 = vadd.f32 %v1709_v60, %v469_v36  ;;  %vm472_vm7 = vweird.f32 %v1709_v60  ;;  %v769_v35 = vmul.f32 %v1779_v7, %v575_v59 }
  0xe5   : > { %v770_v11 = vadd.f32 %v1612_v50, %v1759_v31  ;;  %1249 = vtanh.f32 %v764_v61  ;;  %v482_v12 = vmul.f32 %v1821_v4, %v1765_v39  ;;  %v777_v6 = vstv %s1787_s15  ;;  %vm1842_vm10 = vmor %vm471_vm4, %vm472_vm7 }
  0xe6   : > { %v731_v15 = vmul.f32 %v727_v62, %v377_v8  ;;  %vm678_vm8 = vweird.f32 %v1674_v29  ;;  %v768_v17 = vadd.f32 %v767_v0, %v723_v58  ;;  %v780_v18 = vstv %s779_s24 }
  0xe7   : > { %v1096_v52 = vmul.f32 -1.442695, %v639_v1  ;;  %v677_v22 = vadd.f32 %v1719_v9, %v676_v13  ;;  %vm679_vm9 = vweird.f32 %v1719_v9  ;;  %v685_v23 = vor.u32 1.1754944e-38, %v684_v55 }
  0xe8   : > { %v1834_v20 = vpop.eup %1245  ;;  %v771_v24 = vmul.f32 %v770_v11, %v731_v15  ;;  %v483_v26 = vsub.f32 1.0, %v482_v12  ;;  %v778_v32 = vmul.f32 %v777_v6, %v768_v17  ;;  %v781_v33 = vmul.f32 %v780_v18, %v1759_v31  ;;  %vm1869_vm13 = vmor %vm678_vm8, %vm679_vm9 }
  0xe9   : > { %1251 = vpow2.f32 %v1096_v52  ;;  %v1847_v34 = vpop.eup %1247  ;;  %vm1849_vm11 = vcmp.eq.f32.partialorder %v682_v51, 8.507059e+37  ;;  %v1855_v38 = vmul.f32 %v1834_v20, %v1797_v49  ;;  %v474_v41 = vsel %vm1842_vm10, %v1709_v60, %v470_v5 }
  0xea   : > { %v772_v40 = vadd.f32 %v771_v24, %v769_v35  ;;  %vm476_vm12 = vcmp.eq.f32.partialorder %v475_v63, 8.507059e+37  ;;  %v490_v3 = vand.u32 2147483647, %v1765_v39  ;;  %v782_v42 = vadd.f32 %v781_v33, %v778_v32 }
  0xeb   : > { %v479_v43 = vsel %vm476_vm12, %v1748_v25, %v474_v41  ;;  %v578_v19 = vmul.f32 %v1817_v56, %v1744_v21  ;;  %v1250_v60 = vpop.eup %1249  ;;  %v681_v63 = vsel %vm1869_vm13, %v1719_v9, %v677_v22  ;;  %vm486_vm14 = vweird.f32 %v1765_v39 }
  0xec   : > { %v492_v29 = vand.u32 2147483648, %v1765_v39  ;;  %v783_v44 = vmul.f32 %v777_v6, %v772_v40  ;;  %v784_v45 = vmul.f32 %v780_v18, %v1779_v7  ;;  %766 = vst [vmem:[%s1549_s30] sm:$0xff] %v1250_v60  ;;  %v484_v2 = vmul.f32 %v1821_v4, %v483_v26  ;;  %v380_v6 = vpop.f32.mrf.mxu1 }
  0xed   : > { %vm487_vm15 = vweird.f32 %v1821_v4  ;;  %v593_v25 = vmul.f32 %v1847_v34, %v1795_v48  ;;  %v579_v10 = vsub.f32 1.0, %v578_v19  ;;  %v690_v9 = vsub.f32 1.0, %v1855_v38 }
  0xee   : > { %v1893_v47 = vadd.f32 %v784_v45, %v783_v44  ;;  %v588_v36 = vand.u32 2147483648, %v1744_v21  ;;  %v720_v7 = vsub.f32 1.0, %v479_v43  ;;  %vm583_vm0 = vweird.f32 %v1817_v56  ;;  %vm488_vm5 = vmor %vm486_vm14, %vm487_vm15 }
  0xef   : > { %v1252_v51 = vpop.eup %1251  ;;  %v580_v53 = vmul.f32 %v1817_v56, %v579_v10  ;;  %v586_v54 = vand.u32 2147483647, %v1744_v21  ;;  %v792_v55 = vmul.f32 %v782_v42, %v479_v43  ;;  %v786_v57 = vmul.f32 %v1754_v27, %v782_v42 }
  0xf0   : > { %v787_v13 = vmul.f32 %v1756_v28, %v1893_v47  ;;  %v1903_v30 = vadd.f32 1.0, %v1252_v51  ;;  %v724_v59 = vmul.f32 %v720_v7, %v1608_v46  ;;  %v485_v58 = vadd.f32 %v1821_v4, %v484_v2 }
  0xf1   : > { %v581_v61 = vadd.f32 %v1817_v56, %v580_v53  ;;  %vm582_vm1 = vweird.f32 %v1744_v21  ;;  %v589_v62 = vor.u32 1.1754944e-38, %v588_v36  ;;  %v802_v1 = vstv %s1862_s27 }
  0xf2   : > { %v788_v0 = vadd.f32 %v787_v13, %v786_v57  ;;  %1253 = vrcp.f32 %v1903_v30  ;;  %vm584_vm2 = vmor %vm582_vm1, %vm583_vm0  ;;  %v805_v5 = vstv %s804_s9  ;;  %v686_v8 = vsel %vm1849_vm11, %v685_v23, %v681_v63 }
  0xf3   : > { %v585_v46 = vsel %vm584_vm2, %v1817_v56, %v581_v61  ;;  %vm587_vm3 = vcmp.eq.f32.partialorder %v586_v54, 8.507059e+37  ;;  %v793_v35 = vadd.f32 %v792_v55, %v724_v59  ;;  %vm1916_vm4 = vcmp.eq.f32.partialorder %v490_v3, 8.507059e+37 }
  0xf4   : > { %v493_v21 = vor.u32 1.1754944e-38, %v492_v29  ;;  %v789_v12 = vmul.f32 %v788_v0, %v686_v8  ;;  %v590_v15 = vsel %vm587_vm3, %v589_v62, %v585_v46  ;;  %v795_v18 = vadd.f32 %v1612_v50, %v782_v42  ;;  %v382_v57 = vpop.f32.mrf.mxu1 }
  0xf5   : > { %v728_v17 = vsub.f32 1.0, %v590_v15  ;;  %v803_v52 = vmul.f32 %v802_v1, %v793_v35  ;;  %v806_v56 = vmul.f32 %v805_v5, %v782_v42  ;;  %v691_v22 = vmul.f32 %v1834_v20, %v690_v9 }
  0xf6   : > { %1255 = vtanh.f32 %v789_v12  ;;  %v489_v23 = vsel %vm488_vm5, %v1821_v4, %v485_v58  ;;  %v594_v24 = vsub.f32 1.0, %v593_v25  ;;  %v794_v26 = vmul.f32 %v1893_v47, %v590_v15 }
  0xf7   : > { %v732_v16 = vmul.f32 %v728_v17, %v380_v6  ;;  %v807_v39 = vadd.f32 %v806_v56, %v803_v52  ;;  %v494_v32 = vsel %vm1916_vm4, %v493_v21, %v489_v23  ;;  %vm598_vm6 = vweird.f32 %v1847_v34 }
  0xf8   : > { %v1932_v33 = vpop.eup %1253  ;;  %v595_v37 = vmul.f32 %v1847_v34, %v594_v24  ;;  %v601_v38 = vand.u32 2147483647, %v1795_v48  ;;  %v603_v40 = vand.u32 2147483648, %v1795_v48  ;;  %vm693_vm7 = vweird.f32 %v1797_v49 }
  0xf9   : > { %vm694_vm8 = vweird.f32 %v1834_v20  ;;  %v699_v4 = vand.u32 2147483648, %v1797_v49  ;;  %v796_v41 = vmul.f32 %v795_v18, %v732_v16  ;;  %v704_v31 = vmul.f32 %v1932_v33, %v1903_v30 }
  0xfa   : > { %v596_v3 = vadd.f32 %v1847_v34, %v595_v37  ;;  %vm597_vm9 = vweird.f32 %v1795_v48  ;;  %v721_v42 = vsub.f32 1.0, %v494_v32  ;;  %v692_v43 = vadd.f32 %v1834_v20, %v691_v22  ;;  %vm695_vm12 = vmor %vm693_vm7, %vm694_vm8 }
  0xfb   : > { %v797_v19 = vadd.f32 %v796_v41, %v794_v26  ;;  %vm599_vm10 = vmor %vm597_vm9, %vm598_vm6  ;;  %v604_v60 = vor.u32 1.1754944e-38, %v603_v40  ;;  %v817_v63 = vmul.f32 %v807_v39, %v494_v32  ;;  %v809_v44 = vmul.f32 %v805_v5, %v1893_v47 }
  0xfc   : > { %v1256_v29 = vpop.eup %1255  ;;  %v600_v45 = vsel %vm599_vm10, %v1847_v34, %v596_v3  ;;  %vm602_vm11 = vcmp.eq.f32.partialorder %v601_v38, 8.507059e+37  ;;  %v725_v2 = vmul.f32 %v721_v42, %v1648_v14  ;;  %v827_v9 = vstv %s1925_s11 }
  0xfd   : > { %791 = vst [vmem:[%s1549_s30 + $0x8] sm:$0xff] %v1256_v29  ;;  %v808_v25 = vmul.f32 %v802_v1, %v797_v19  ;;  %v605_v10 = vsel %vm602_vm11, %v604_v60, %v600_v45  ;;  %v830_v48 = vstv %s829_s12  ;;  %v705_v36 = vsub.f32 1.0, %v704_v31 }
  0xfe   : > { %v729_v7 = vsub.f32 1.0, %v605_v10  ;;  %v818_v51 = vadd.f32 %v817_v63, %v725_v2  ;;  %v820_v53 = vadd.f32 %v1612_v50, %v807_v39  ;;  %v697_v54 = vand.u32 2147483647, %v1797_v49 }
  0xff   : > { %v810_v55 = vadd.f32 %v809_v44, %v808_v25  ;;  %v831_v47 = vmul.f32 %v830_v48, %v807_v39  ;;  %v696_v13 = vsel %vm695_vm12, %v1834_v20, %v692_v43  ;;  %v811_v59 = vmul.f32 %v1754_v27, %v807_v39 }
 0x100   : > { %v733_v14 = vmul.f32 %v729_v7, %v382_v57  ;;  %v828_v34 = vmul.f32 %v827_v9, %v818_v51  ;;  %v700_v50 = vor.u32 1.1754944e-38, %v699_v4  ;;  %v706_v62 = vmul.f32 %v1932_v33, %v705_v36 }
 0x101   : > { %v812_v58 = vmul.f32 %v1756_v28, %v810_v55  ;;  %v819_v61 = vmul.f32 %v810_v55, %v605_v10  ;;  %vm698_vm13 = vcmp.eq.f32.partialorder %v697_v54, 8.507059e+37  ;;  %vm709_vm14 = vweird.f32 %v1932_v33 }
 0x102   : > { %v821_v0 = vmul.f32 %v820_v53, %v733_v14  ;;  %v832_v1 = vadd.f32 %v831_v47, %v828_v34  ;;  %v701_v8 = vsel %vm698_vm13, %v700_v50, %v696_v13  ;;  %v707_v35 = vadd.f32 %v1932_v33, %v706_v62 }
 0x103   : > { %v813_v5 = vadd.f32 %v812_v58, %v811_v59  ;;  %v834_v11 = vmul.f32 %v830_v48, %v810_v55  ;;  %v714_v21 = vand.u32 2147483648, %v1903_v30  ;;  %vm708_vm15 = vweird.f32 %v1903_v30 }
 0x104   : > { %v822_v49 = vadd.f32 %v821_v0, %v819_v61  ;;  %842 = vst [vmem:[#allocation2] sm:$0xff] %v832_v1  ;;  %v712_v12 = vand.u32 2147483647, %v1903_v30  ;;  %vm710_vm0 = vmor %vm708_vm15, %vm709_vm14  ;;  %v836_v17 = vmul.f32 %v1754_v27, %v832_v1 }
 0x105   : > { %v814_v46 = vmul.f32 %v813_v5, %v701_v8  ;;  %v711_v6 = vsel %vm710_vm0, %v1932_v33, %v707_v35  ;;  %v715_v52 = vor.u32 1.1754944e-38, %v714_v21 }
 0x106   : > { %v833_v20 = vmul.f32 %v827_v9, %v822_v49  ;;  %vm713_vm1 = vcmp.eq.f32.partialorder %v712_v12, 8.507059e+37 }
 0x107   : > { %1257 = vtanh.f32 %v814_v46  ;;  %v716_v23 = vsel %vm713_vm1, %v715_v52, %v711_v6 }
 0x108   : > { %v835_v15 = vadd.f32 %v834_v11, %v833_v20 }
 0x10a   : > { %v837_v18 = vmul.f32 %v1756_v28, %v835_v15  ;;  %843 = vst [vmem:[#allocation3] sm:$0xff] %v835_v15 }
 0x10c   : > { %v838_v56 = vadd.f32 %v837_v18, %v836_v17 }
 0x10d   : > { %v1258_v22 = vpop.eup %1257 }
 0x10e   : > { %816 = vst [vmem:[%s1549_s30 + $0x10] sm:$0xff] %v1258_v22  ;;  %v839_v24 = vmul.f32 %v838_v56, %v716_v23 }
 0x110   : > { %1259 = vtanh.f32 %v839_v24 }
 0x113   : > { %847 = sbr.rel (%p1098_p9) target bundleno = 282 (0x11a), region = 44 }
 0x116   : > { %v1260_v16 = vpop.eup %1259 }
 0x117   : > { %841 = vst [vmem:[%s1549_s30 + $0x18] sm:$0xff] %v1260_v16 }
 0x118   : > { %848 = vst [vmem:[#allocation8] sm:$0xff] %v832_v1 }
 0x119   : > { %849 = vst [vmem:[#allocation10] sm:$0xff] %v835_v15 }
 0x11a PF: > { %s1438_s15 = smov [#allocation8]   ;;  %s883_s25 = sshll.u32 %s2030_s4, 4  ;;  %s884_s25 = int_to_ptr.hbm [resolvable:$true] %s883_s25 }
 0x11b   : > { %s881_s16 = sshll.u32 %s1438_s15, 4  ;;  %s1115_s27 = sshll.u32 %s1425_s21, 5  ;;  %s882_s16 = int_to_ptr.vmem [resolvable:$true] %s881_s16 }
 0x11c   : > { %1124 = dma.vmem_to_hbm [thread:$0]  (%p1508_p2), %s882_s16, 128, %s884_s25, [#allocation9]  }
 0x11d   : > { %s863_s9 = scalar_lea.hbm %s2029_s3, %s1115_s27  ;;  %s864_s10 = sshll.u32 %s1549_s30, 4  ;;  %s865_s10 = int_to_ptr.vmem [resolvable:$true] %s864_s10 }
 0x11e   : > { %s866_s11 = sshll.u32 %s863_s9, 4  ;;  %s851_s12 = scalar_lea.sflag [#allocation6], %s267_s13  ;;  %s867_s11 = int_to_ptr.hbm [resolvable:$true] %s866_s11 }
 0x11f   : > { %s1333_s15 = sshra.s32 %s867_s11, 4  ;;  %s1339_s21 = scalar_lea.hbm %s2029_s3, 96  ;;  %s1334_s15 = int_to_ptr.hbm [resolvable:$true] %s1333_s15 }
 0x120   : > { %s1335_s17 = scalar_lea.hbm %s1334_s15, 32  ;;  %p1340_p13 = scmp.lt.s32.totalorder %s1334_s15, %s2029_s3 }
 0x121   : > { %p1336_p10 = scmp.ne.s32.totalorder %s1334_s15, %s1335_s17  ;;  %p1341_p0 = scmp.lt.s32.totalorder %s1339_s21, %s1335_s17 }
 0x123   : > { %p1337_p11 = pnand %p1336_p10, %p1518_p4  ;;  %p1342_p1 = por %p1341_p0, %p1340_p13 }
 0x125   : > { %p1338_p12 = pneg %p1337_p11 }
 0x127   : > { %p1343_p3 = pnand %p1342_p1, %p1338_p12 }
 0x129   : > { %1346 = shalt.err (!%p1343_p3)
}
 0x12a   : > { %s1439_s13 = smov 128   ;;  %s1440_s30 = smov 8  }
 0x12b   : > { %1122 = dma.vmem_to_hbm [thread:$0]  (%p1518_p4), %s865_s10, 512, %s867_s11, %s851_s12, %s1439_s13, %s1439_s13, %s1440_s30  }
 0x12c   : > { %s1441_s27 = smov [#allocation10]   ;;  %s897_s16 = sshll.u32 %s2031_s5, 4  ;;  %s898_s16 = int_to_ptr.hbm [resolvable:$true] %s897_s16 }
 0x12d   : > { %s895_s14 = sshll.u32 %s1441_s27, 4  ;;  %s896_s14 = int_to_ptr.vmem [resolvable:$true] %s895_s14 }
 0x12e   : > { %1126 = dma.vmem_to_hbm [thread:$0]  (%p1508_p2), %s896_s14, 128, %s898_s16, [#allocation9]  }
 0x12f   : > { %1404 = dma.done.wait (%p1508_p2), [#allocation9], 256  }
 0x130   : > { %1406 = vsyncadd (%p1508_p2), [#allocation9], 4294967040 }
 0x131 PF: > { %p1146_p4 = scmp.ge.s32.totalorder %s1433_s23, 2  ;;  %s919_s29 = sand.u32 1, %s1413_s18  }
 0x132   : > { %s920_s10 = scalar_lea.sflag [#allocation6], %s919_s29 }
 0x133   : > { %p1137_p5 = pnand %p1146_p4, %p1525_p8 }
 0x135   : > { %p1138_p6 = pneg %p1137_p5 }
 0x137   : > { %1408 = dma.done.wait (%p1138_p6), %s920_s10, 512  }
 0x138   : > { %1410 = vsyncadd (%p1138_p6), %s920_s10, 4294966784  ;;  %s21_s23 = sadd.s32 1, %s1433_s23   ;;  %s2060_s18 = smov %s1417_s19 }
 0x139   : > { %p18_p7 = scmp.ge.s32.totalorder %s21_s23, 5   ;;  %s2061_s19 = smov %s1421_s20 }
 0x13a   : > { %s2062_s20 = smov %s1531_s7  ;;  %s2063_s21 = smov %s1429_s22 }
 0x13b   : > { %s2064_s22 = smov %s2066_s26  ;;  %20 = sbr.rel (!%p18_p7) target bundleno = 6 (0x6), region = 106 }
 0x140   :  { %926 = vsyncpa [#allocation5], 1 }
 0x141   :  { %928 = vsyncpa [#allocation5 + $0x1], 1 }
 0x142   :  { %929 = vsyncpa [#allocation6], 1 }
 0x143   :  { %931 = vsyncpa [#allocation6 + $0x1], 1 }
 0x144   :  { %932 = vsyncpa [#allocation9], 1 }

</bundles_post_ra>
